<compile_context>
chip_gen: v5e
topology: v5e:2x2
jax: 0.10.0
libtpu: 0.0.40
codegen_flags: <defaults>
</compile_context>

<pallas_src>
import jax
import jax.numpy as jnp
from jax.experimental import pallas as pl
from jax.experimental.pallas import tpu as pltpu


def _round_up(x: int, m: int) -> int:
    return ((x + m - 1) // m) * m


def _pick_tile(padded: int, cap: int, align: int) -> int:
    """Largest multiple of `align` that is <= cap and divides `padded`."""
    cap = min(cap, padded)
    t = max(cap - cap % align, align)
    while padded % t != 0:
        t -= align
    return t


def _linear_temp_kernel_single_k(inv_t_ref, x_ref, w_ref, b_ref, o_ref):
    """Whole reduction fits one K tile: no accumulator scratch needed.

    inv_t_ref: SMEM scalar-prefetch ref, shape (1,)   (1 / temperature)
    x_ref:     VMEM tile (tm, Kp)
    w_ref:     VMEM tile (Kp, tn)
    b_ref:     VMEM tile (1, tn)
    o_ref:     VMEM tile (tm, tn)
    """
    acc = jnp.dot(x_ref[...], w_ref[...], preferred_element_type=jnp.float32)
    o_ref[...] = ((acc + b_ref[...].astype(jnp.float32)) * inv_t_ref[0]).astype(
        o_ref.dtype
    )


def _linear_temp_kernel_multi_k(inv_t_ref, x_ref, w_ref, b_ref, o_ref, acc_ref):
    """Tiled fused linear + temperature scaling with a K reduction loop.

    inv_t_ref: SMEM scalar-prefetch ref, shape (1,)   (1 / temperature)
    x_ref:     VMEM tile (tm, tk)
    w_ref:     VMEM tile (tk, tn)
    b_ref:     VMEM tile (1, tn)
    o_ref:     VMEM tile (tm, tn)
    acc_ref:   VMEM scratch (tm, tn) f32
    """
    k = pl.program_id(2)

    @pl.when(k == 0)
    def _():
        # Fold the bias into the accumulator init: saves a zero-fill store
        # and a load/add in the finalize branch.
        acc_ref[...] = jnp.broadcast_to(
            b_ref[...].astype(jnp.float32), acc_ref.shape
        )

    acc_ref[...] += jnp.dot(
        x_ref[...], w_ref[...], preferred_element_type=jnp.float32
    )

    @pl.when(k == pl.num_programs(2) - 1)
    def _():
        # Pure VPU multiply: 1/temperature was computed once in the wrapper.
        o_ref[...] = (acc_ref[...] * inv_t_ref[0]).astype(o_ref.dtype)


def model_with_temperature_forward(x_nchw, w, b, temperature):
    """
    x_nchw:      [B, C, H, W] float32
    w:           [C*H*W, N]   float32  (synthetic linear "model")
    b:           [N]          float32
    temperature: scalar float32 parameter (nn.Parameter(torch.ones(1)*tau))
    returns:     [B, N] float32  (x.view(B,-1) @ W + b) / temperature
    """
    B = x_nchw.shape[0]
    F_in = 1
    for d in x_nchw.shape[1:]:
        F_in *= d
    N = w.shape[1]

    # --- pad only to the hardware (8, 128) granularity, never to tile size ---
    Mp = _round_up(B, 8)
    Np = _round_up(N, 128)
    Kp = _round_up(F_in, 128)

    # --- tile selection (f32); 256-aligned M tile for v6e/v7x MXU when big ---
    tm_cap = 256 if Mp >= 256 else 128
    tn_cap = 512
    tk_cap = 2048

    tm = _pick_tile(Mp, tm_cap, 8)
    tn = _pick_tile(Np, tn_cap, 128)
    tk = _pick_tile(Kp, tk_cap, 128)

    # Expose >= 2 parallel output blocks (v7x second TensorCore) when possible.
    if (Mp // tm) * (Np // tn) < 2:
        if Mp >= 16 and Mp // tm == 1:
            tm = _pick_tile(Mp, Mp // 2, 8)
        elif Np >= 256 and Np // tn == 1:
            tn = _pick_tile(Np, Np // 2, 128)

    # --- glue: flatten (torch .view(B, -1)); pad ONLY when not aligned --------
    x2d = x_nchw.reshape(B, F_in).astype(jnp.float32)
    if (Mp, Kp) != (B, F_in):
        x2d = jnp.pad(x2d, ((0, Mp - B), (0, Kp - F_in)))
    w2d = w.astype(jnp.float32)
    if (Kp, Np) != (F_in, N):
        w2d = jnp.pad(w2d, ((0, Kp - F_in), (0, Np - N)))
    b1d = b.astype(jnp.float32)
    if Np != N:
        b1d = jnp.pad(b1d, (0, Np - N))
    b2d = b1d.reshape(1, Np)

    # Reciprocal computed once outside the kernel, scalar-prefetched to SMEM.
    # (~1 ulp off torch's divide; well within calibration tolerance.)
    inv_t = (1.0 / jnp.asarray(temperature, jnp.float32)).reshape(1)

    num_i = Mp // tm
    num_j = Np // tn
    num_k = Kp // tk

    if num_k == 1:
        # ---------------- single-K fast path: 2-D grid, no acc scratch -------
        grid = (num_i, num_j)
        vmem_bytes = 4 * 2 * (tm * Kp + Kp * tn + tn + tm * tn)
        cost = pl.CostEstimate(
            flops=2 * Mp * Kp * Np,
            transcendentals=0,
            bytes_accessed=4
            * (Mp * Kp * num_j + Kp * Np * num_i + Np * num_i + Mp * Np),
        )
        grid_spec = pltpu.PrefetchScalarGridSpec(
            num_scalar_prefetch=1,  # inv_t -> SMEM
            grid=grid,
            in_specs=[
                pl.BlockSpec((tm, Kp), lambda i, j, t: (i, 0)),  # x tile
                pl.BlockSpec((Kp, tn), lambda i, j, t: (0, j)),  # w tile
                pl.BlockSpec((1, tn), lambda i, j, t: (0, j)),   # bias tile
            ],
            out_specs=pl.BlockSpec((tm, tn), lambda i, j, t: (i, j)),
        )
        kernel = _linear_temp_kernel_single_k
        dim_sem = ("parallel", "parallel")
    else:
        # ---------------- general path: K-last reduction with f32 acc --------
        grid = (num_i, num_j, num_k)
        vmem_bytes = 4 * (2 * (tm * tk + tk * tn + tn + tm * tn) + tm * tn)
        cost = pl.CostEstimate(
            flops=2 * Mp * Kp * Np,
            transcendentals=0,
            bytes_accessed=4
            * (
                Mp * Kp * num_j
                + Kp * Np * num_i
                + Np * num_i * num_k
                + Mp * Np
            ),
        )
        grid_spec = pltpu.PrefetchScalarGridSpec(
            num_scalar_prefetch=1,  # inv_t -> SMEM
            grid=grid,
            in_specs=[
                pl.BlockSpec((tm, tk), lambda i, j, k, t: (i, k)),  # x tile
                pl.BlockSpec((tk, tn), lambda i, j, k, t: (k, j)),  # w tile
                pl.BlockSpec((1, tn), lambda i, j, k, t: (0, j)),   # bias tile
            ],
            out_specs=pl.BlockSpec((tm, tn), lambda i, j, k, t: (i, j)),
            scratch_shapes=[pltpu.VMEM((tm, tn), jnp.float32)],
        )
        kernel = _linear_temp_kernel_multi_k
        dim_sem = ("parallel", "parallel", "arbitrary")

    # Scoped VMEM: working set + headroom, capped at 36 MiB (safe on v7x's
    # 64 MiB physical / 32 MiB default scoped VMEM as well as v5e/v6e).
    vmem_limit = min(max(vmem_bytes + (2 << 20), 4 << 20), 36 << 20)

    out_pad = pl.pallas_call(
        kernel,
        out_shape=jax.ShapeDtypeStruct((Mp, Np), jnp.float32),
        grid_spec=grid_spec,
        compiler_params=pltpu.CompilerParams(
            dimension_semantics=dim_sem,
            vmem_limit_bytes=vmem_limit,
        ),
        cost_estimate=cost,
    )(inv_t, x2d, w2d, b2d)

    # strip padding back to the logical shape (no-op slice if already aligned)
    if (Mp, Np) == (B, N):
        return out_pad
    return out_pad[:B, :N]


# TODO(synk): set_temperature() (LBFGS fitting loop) and _ECELoss (data-dependent
# boolean-mask binning / .item() control flow) are host-side calibration
# utilities, not part of forward(); they are not implemented as Pallas kernels.


if __name__ == "__main__":
    key = jax.random.PRNGKey(0)
    k_x, k_w, k_b = jax.random.split(key, 3)

    # small shapes consistent with an NCHW conv-model input
    B, C, H, W = 2, 4, 16, 16
    NUM_CLASSES = 10
    F_in = C * H * W

    x = jax.random.normal(k_x, (B, C, H, W), dtype=jnp.float32)

    # deterministic synthetic "model" parameters (linear classifier)
    w = jax.random.normal(k_w, (F_in, NUM_CLASSES), dtype=jnp.float32) * 0.02
    b = jax.random.normal(k_b, (NUM_CLASSES,), dtype=jnp.float32) * 0.1

    tau = 1.5  # temperature parameter (torch.ones(1) * tau)
    temperature = jnp.array(tau, dtype=jnp.float32)

    out = model_with_temperature_forward(x, w, b, temperature)
    out = jax.block_until_ready(out)

    # pure-JAX reference for correctness
    ref = (x.reshape(B, F_in) @ w + b) / temperature
    assert out.shape == (B, NUM_CLASSES)
    assert jnp.allclose(out, ref, atol=1e-4, rtol=1e-4), "mismatch vs reference"

    print("KERNEL_OK")
</pallas_src>

<mosaic_0001>
module attributes {stable_mosaic.version = 11 : i64} {
  func.func @_linear_temp_kernel_single_k(%arg0: i32, %arg1: i32, %arg2: memref<1xf32, #tpu.memory_space<smem>>, %arg3: memref<8x1024xf32, #tpu.memory_space<vmem>>, %arg4: memref<1024x128xf32, #tpu.memory_space<vmem>>, %arg5: memref<1x128xf32, #tpu.memory_space<vmem>>, %arg6: memref<8x128xf32, #tpu.memory_space<vmem>>) attributes {dimension_semantics = [#tpu.dimension_semantics<parallel>, #tpu.dimension_semantics<parallel>], iteration_bounds = array<i64: 1, 1>, scalar_prefetch = 1 : i64, scratch_operands = 0 : i64, tpu.core_type = #tpu.core_type<tc>, window_params = [{transform_indices = @transform_0, window_bounds = array<i64: 8, 1024>}, {transform_indices = @transform_1, window_bounds = array<i64: 1024, 128>}, {transform_indices = @transform_2, window_bounds = array<i64: 1, 128>}, {transform_indices = @transform_3, window_bounds = array<i64: 8, 128>}]} {
    %c0 = arith.constant 0 : index
    %c0_0 = arith.constant 0 : index
    %0 = vector.load %arg3[%c0, %c0_0] : memref<8x1024xf32, #tpu.memory_space<vmem>>, vector<8x1024xf32>
    %c0_1 = arith.constant 0 : index
    %c0_2 = arith.constant 0 : index
    %1 = vector.load %arg4[%c0_1, %c0_2] : memref<1024x128xf32, #tpu.memory_space<vmem>>, vector<1024x128xf32>
    %cst = arith.constant dense<0.000000e+00> : vector<8x128xf32>
    %2 = tpu.matmul %0, %1, %cst {dimension_numbers = #tpu.dot_dimension_numbers<[1], [0], [0], [1], [0, 0, 1, 1], [], []>} : vector<8x1024xf32>, vector<1024x128xf32>, vector<8x128xf32> -> vector<8x128xf32>
    %c0_3 = arith.constant 0 : index
    %c0_4 = arith.constant 0 : index
    %3 = vector.load %arg5[%c0_3, %c0_4] : memref<1x128xf32, #tpu.memory_space<vmem>>, vector<1x128xf32>
    %4 = vector.broadcast %3 : vector<1x128xf32> to vector<8x128xf32>
    %5 = arith.addf %2, %4 : vector<8x128xf32>
    %c0_5 = arith.constant 0 : index
    %6 = memref.load %arg2[%c0_5] : memref<1xf32, #tpu.memory_space<smem>>
    %7 = vector.broadcast %6 : f32 to vector<8x128xf32>
    %8 = arith.mulf %5, %7 : vector<8x128xf32>
    %c0_6 = arith.constant 0 : index
    %c0_7 = arith.constant 0 : index
    %9 = vector.load %arg6[%c0_6, %c0_7] : memref<8x128xf32, #tpu.memory_space<vmem>>, vector<8x128xf32>
    tpu.vector_store %arg6[%c0_6, %c0_7], %8 {strides = array<i32>} : memref<8x128xf32, #tpu.memory_space<vmem>>, vector<8x128xf32>,
    return
  }
  func.func @transform_0(%arg0: i32, %arg1: i32, %arg2: memref<1xf32, #tpu.memory_space<smem>>) -> (i32, i32) {
    %c0_i32 = arith.constant 0 : i32
    %c0_i32_0 = arith.constant 0 : i32
    return %arg0, %c0_i32 : i32, i32
  }
  func.func @transform_1(%arg0: i32, %arg1: i32, %arg2: memref<1xf32, #tpu.memory_space<smem>>) -> (i32, i32) {
    %c0_i32 = arith.constant 0 : i32
    %c0_i32_0 = arith.constant 0 : i32
    return %c0_i32, %arg1 : i32, i32
  }
  func.func @transform_2(%arg0: i32, %arg1: i32, %arg2: memref<1xf32, #tpu.memory_space<smem>>) -> (i32, i32) {
    %c0_i32 = arith.constant 0 : i32
    %c0_i32_0 = arith.constant 0 : i32
    return %c0_i32, %arg1 : i32, i32
  }
  func.func @transform_3(%arg0: i32, %arg1: i32, %arg2: memref<1xf32, #tpu.memory_space<smem>>) -> (i32, i32) {
    %c0_i32 = arith.constant 0 : i32
    return %arg0, %arg1 : i32, i32
  }
}

</mosaic_0001>

<bundles_post_ra>
// kernel: tpu_custom_call.1
= control target key start
LH: loop header
LB: loop body
LE: loop exit
PB: predicated region body
PF: predicated region fallthrough
CT: control target
= control target key end

     0   :  { %10 = vsyncpa [#allocation5], 0  ;;  %s498_s0 = inlined_call_operand.<no memory space> [shape: f32[1], index: 0, kind: input, shape index: {}]   ;;  %s499_s1 = inlined_call_operand.hbm [shape: f32[8,1024], index: 1, kind: input, shape index: {}]   ;;  %s500_s2 = inlined_call_operand.hbm [shape: f32[1024,128], index: 2, kind: input, shape index: {}]   ;;  %s501_s3 = inlined_call_operand.vmem [shape: f32[1,128], index: 3, kind: input, shape index: {}]   ;;  %s502_s4 = inlined_call_operand.hbm [shape: f32[8,128], index: 4, kind: output, shape index: {}]  }
   0x1   :  { %11 = vsyncpa [#allocation8], 0 }
   0x2   :  { %12 = vsyncpa [#allocation6], 0  ;;  %s18_s17 = sshll.u32 %s499_s1, 4  ;;  %s453_s18 = smov [#allocation4]   ;;  %s19_s17 = int_to_ptr.hbm [resolvable:$true] %s18_s17 }
   0x3   :  { %s20_s19 = sshll.u32 %s453_s18, 4  ;;  %s28_s22 = sshll.u32 %s500_s2, 4  ;;  %s21_s19 = int_to_ptr.vmem [resolvable:$true] %s20_s19  ;;  %s29_s22 = int_to_ptr.hbm [resolvable:$true] %s28_s22 }
   0x4   :  { %23 = dma.hbm_to_vmem [thread:$0]  %s19_s17, 1024, %s21_s19, [#allocation5]  }
   0x5   :  { %s454_s23 = smov [#allocation7]   ;;  %s455_s25 = smov 128  }
   0x6   :  { %s30_s24 = sshll.u32 %s454_s23, 4  ;;  %s456_s26 = smov 8   ;;  %s31_s24 = int_to_ptr.vmem [resolvable:$true] %s30_s24 }
   0x7   :  { %36 = dma.hbm_to_vmem [thread:$0]  %s29_s22, 16384, %s31_s24, [#allocation8], %s455_s25, %s455_s25, %s456_s26  }
   0x8   :  { %447 = dma.done.wait [#allocation5], 1024  }
   0x9   :  { %448 = vsyncadd [#allocation5], 4294966272 }
   0xa   :  { %449 = dma.done.wait [#allocation8], 16384  }
   0xb   :  { %450 = vsyncadd [#allocation8], 4294950912  ;;  %v102_v0 = vld [vmem:[#allocation7 + $0x178] sm:$0xff]  ;;  %v101_v2 = vld [vmem:[#allocation7 + $0x170] sm:$0xff]  ;;  %s358_s6 = sshll.u32 %s502_s4, 4  ;;  %s359_s6 = int_to_ptr.hbm [resolvable:$true] %s358_s6 }
   0xc   :  { %v70_v1 = vld [vmem:[#allocation7 + $0x78] sm:$0xff]  ;;  %227 = vmatpush.msra.mxu2 %v102_v0  ;;  %v69_v4 = vld [vmem:[#allocation7 + $0x70] sm:$0xff]  ;;  %v100_v6 = vld [vmem:[#allocation7 + $0x168] sm:$0xff] }
   0xd   :  { %187 = vmatpush.msra.mxu0 %v70_v1  ;;  %v118_v3 = vld [vmem:[#allocation7 + $0x1f8] sm:$0xff]  ;;  %v117_v7 = vld [vmem:[#allocation7 + $0x1f0] sm:$0xff]  ;;  %v68_v8 = vld [vmem:[#allocation7 + $0x68] sm:$0xff] }
   0xe   :  { %v86_v5 = vld [vmem:[#allocation7 + $0xf8] sm:$0xff]  ;;  %247 = vmatpush.msra.mxu3 %v118_v3  ;;  %228 = vmatpush.msra.mxu2 %v101_v2  ;;  %v85_v9 = vld [vmem:[#allocation7 + $0xf0] sm:$0xff]  ;;  %v116_v10 = vld [vmem:[#allocation7 + $0x1e8] sm:$0xff] }
   0xf   :  { %207 = vmatpush.msra.mxu1 %v86_v5  ;;  %188 = vmatpush.msra.mxu0 %v69_v4  ;;  %v99_v11 = vld [vmem:[#allocation7 + $0x160] sm:$0xff]  ;;  %v84_v13 = vld [vmem:[#allocation7 + $0xe8] sm:$0xff]  ;;  %v98_v16 = vld [vmem:[#allocation7 + $0x158] sm:$0xff] }
  0x10   :  { %248 = vmatpush.msra.mxu3 %v117_v7  ;;  %v67_v12 = vld [vmem:[#allocation7 + $0x60] sm:$0xff]  ;;  %229 = vmatpush.msra.mxu2 %v100_v6  ;;  %v66_v17 = vld [vmem:[#allocation7 + $0x58] sm:$0xff]  ;;  %v97_v20 = vld [vmem:[#allocation7 + $0x150] sm:$0xff] }
  0x11   :  { %208 = vmatpush.msra.mxu1 %v85_v9  ;;  %189 = vmatpush.msra.mxu0 %v68_v8  ;;  %v115_v14 = vld [vmem:[#allocation7 + $0x1e0] sm:$0xff]  ;;  %v114_v18 = vld [vmem:[#allocation7 + $0x1d8] sm:$0xff]  ;;  %v65_v21 = vld [vmem:[#allocation7 + $0x50] sm:$0xff] }
  0x12   :  { %v83_v15 = vld [vmem:[#allocation7 + $0xe0] sm:$0xff]  ;;  %249 = vmatpush.msra.mxu3 %v116_v10  ;;  %230 = vmatpush.msra.mxu2 %v99_v11  ;;  %v82_v19 = vld [vmem:[#allocation7 + $0xd8] sm:$0xff]  ;;  %v113_v22 = vld [vmem:[#allocation7 + $0x1d0] sm:$0xff] }
  0x13   :  { %209 = vmatpush.msra.mxu1 %v84_v13  ;;  %190 = vmatpush.msra.mxu0 %v67_v12  ;;  %v81_v23 = vld [vmem:[#allocation7 + $0xd0] sm:$0xff]  ;;  %v96_v24 = vld [vmem:[#allocation7 + $0x148] sm:$0xff]  ;;  %v95_v28 = vld [vmem:[#allocation7 + $0x140] sm:$0xff] }
  0x14   :  { %250 = vmatpush.msra.mxu3 %v115_v14  ;;  %231 = vmatpush.msra.mxu2 %v98_v16  ;;  %v64_v25 = vld [vmem:[#allocation7 + $0x48] sm:$0xff]  ;;  %v63_v29 = vld [vmem:[#allocation7 + $0x40] sm:$0xff]  ;;  %v94_v32 = vld [vmem:[#allocation7 + $0x138] sm:$0xff] }
  0x15   :  { %210 = vmatpush.msra.mxu1 %v83_v15  ;;  %191 = vmatpush.msra.mxu0 %v66_v17  ;;  %v112_v26 = vld [vmem:[#allocation7 + $0x1c8] sm:$0xff]  ;;  %v111_v30 = vld [vmem:[#allocation7 + $0x1c0] sm:$0xff]  ;;  %v62_v33 = vld [vmem:[#allocation7 + $0x38] sm:$0xff] }
  0x16   :  { %251 = vmatpush.msra.mxu3 %v114_v18  ;;  %232 = vmatpush.msra.mxu2 %v97_v20  ;;  %v80_v27 = vld [vmem:[#allocation7 + $0xc8] sm:$0xff]  ;;  %v79_v31 = vld [vmem:[#allocation7 + $0xc0] sm:$0xff]  ;;  %v110_v34 = vld [vmem:[#allocation7 + $0x1b8] sm:$0xff] }
  0x17   :  { %211 = vmatpush.msra.mxu1 %v82_v19  ;;  %192 = vmatpush.msra.mxu0 %v65_v21  ;;  %v78_v35 = vld [vmem:[#allocation7 + $0xb8] sm:$0xff]  ;;  %v93_v36 = vld [vmem:[#allocation7 + $0x130] sm:$0xff]  ;;  %v92_v40 = vld [vmem:[#allocation7 + $0x128] sm:$0xff] }
  0x18   :  { %252 = vmatpush.msra.mxu3 %v113_v22  ;;  %233 = vmatpush.msra.mxu2 %v96_v24  ;;  %v61_v37 = vld [vmem:[#allocation7 + $0x30] sm:$0xff]  ;;  %v60_v41 = vld [vmem:[#allocation7 + $0x28] sm:$0xff]  ;;  %v91_v44 = vld [vmem:[#allocation7 + $0x120] sm:$0xff] }
  0x19   :  { %212 = vmatpush.msra.mxu1 %v81_v23  ;;  %193 = vmatpush.msra.mxu0 %v64_v25  ;;  %v109_v38 = vld [vmem:[#allocation7 + $0x1b0] sm:$0xff]  ;;  %v108_v42 = vld [vmem:[#allocation7 + $0x1a8] sm:$0xff]  ;;  %v59_v45 = vld [vmem:[#allocation7 + $0x20] sm:$0xff] }
  0x1a   :  { %253 = vmatpush.msra.mxu3 %v112_v26  ;;  %234 = vmatpush.msra.mxu2 %v95_v28  ;;  %v77_v39 = vld [vmem:[#allocation7 + $0xb0] sm:$0xff]  ;;  %v76_v43 = vld [vmem:[#allocation7 + $0xa8] sm:$0xff]  ;;  %v107_v46 = vld [vmem:[#allocation7 + $0x1a0] sm:$0xff] }
  0x1b   :  { %213 = vmatpush.msra.mxu1 %v80_v27  ;;  %194 = vmatpush.msra.mxu0 %v63_v29  ;;  %v75_v47 = vld [vmem:[#allocation7 + $0xa0] sm:$0xff]  ;;  %v90_v48 = vld [vmem:[#allocation7 + $0x118] sm:$0xff]  ;;  %v89_v52 = vld [vmem:[#allocation7 + $0x110] sm:$0xff] }
  0x1c   :  { %254 = vmatpush.msra.mxu3 %v111_v30  ;;  %235 = vmatpush.msra.mxu2 %v94_v32  ;;  %v58_v49 = vld [vmem:[#allocation7 + $0x18] sm:$0xff]  ;;  %v57_v53 = vld [vmem:[#allocation7 + $0x10] sm:$0xff]  ;;  %v88_v56 = vld [vmem:[#allocation7 + $0x108] sm:$0xff] }
  0x1d   :  { %214 = vmatpush.msra.mxu1 %v79_v31  ;;  %195 = vmatpush.msra.mxu0 %v62_v33  ;;  %v106_v50 = vld [vmem:[#allocation7 + $0x198] sm:$0xff]  ;;  %v105_v54 = vld [vmem:[#allocation7 + $0x190] sm:$0xff]  ;;  %v56_v57 = vld [vmem:[#allocation7 + $0x8] sm:$0xff] }
  0x1e   :  { %255 = vmatpush.msra.mxu3 %v110_v34  ;;  %236 = vmatpush.msra.mxu2 %v93_v36  ;;  %v74_v51 = vld [vmem:[#allocation7 + $0x98] sm:$0xff]  ;;  %v73_v55 = vld [vmem:[#allocation7 + $0x90] sm:$0xff]  ;;  %v104_v58 = vld [vmem:[#allocation7 + $0x188] sm:$0xff] }
  0x1f   :  { %215 = vmatpush.msra.mxu1 %v78_v35  ;;  %196 = vmatpush.msra.mxu0 %v61_v37  ;;  %v72_v59 = vld [vmem:[#allocation7 + $0x88] sm:$0xff]  ;;  %v87_v60 = vld [vmem:[#allocation7 + $0x100] sm:$0xff]  ;;  %v166_v62 = vld [vmem:[#allocation7 + $0x378] sm:$0xff] }
  0x20   :  { %256 = vmatpush.msra.mxu3 %v109_v38  ;;  %237 = vmatpush.msra.mxu2 %v92_v40  ;;  %v55_v61 = vld [vmem:[#allocation7] sm:$0xff]  ;;  %v134_v0 = vld [vmem:[#allocation7 + $0x278] sm:$0xff]  ;;  %v165_v2 = vld [vmem:[#allocation7 + $0x370] sm:$0xff] }
  0x21   :  { %216 = vmatpush.msra.mxu1 %v77_v39  ;;  %197 = vmatpush.msra.mxu0 %v60_v41  ;;  %v103_v63 = vld [vmem:[#allocation7 + $0x180] sm:$0xff]  ;;  %v182_v1 = vld [vmem:[#allocation7 + $0x3f8] sm:$0xff]  ;;  %v133_v4 = vld [vmem:[#allocation7 + $0x270] sm:$0xff] }
  0x22   :  { %257 = vmatpush.msra.mxu3 %v108_v42  ;;  %238 = vmatpush.msra.mxu2 %v91_v44  ;;  %v71_v3 = vld [vmem:[#allocation7 + $0x80] sm:$0xff]  ;;  %v150_v5 = vld [vmem:[#allocation7 + $0x2f8] sm:$0xff]  ;;  %v164_v6 = vld [vmem:[#allocation7 + $0x368] sm:$0xff] }
  0x23   :  { %217 = vmatpush.msra.mxu1 %v76_v43  ;;  %198 = vmatpush.msra.mxu0 %v59_v45  ;;  %v181_v7 = vld [vmem:[#allocation7 + $0x3f0] sm:$0xff]  ;;  %v132_v8 = vld [vmem:[#allocation7 + $0x268] sm:$0xff]  ;;  %v163_v10 = vld [vmem:[#allocation7 + $0x360] sm:$0xff] }
  0x24   :  { %258 = vmatpush.msra.mxu3 %v107_v46  ;;  %239 = vmatpush.msra.mxu2 %v90_v48  ;;  %v149_v9 = vld [vmem:[#allocation7 + $0x2f0] sm:$0xff]  ;;  %v180_v11 = vld [vmem:[#allocation7 + $0x3e8] sm:$0xff]  ;;  %v131_v12 = vld [vmem:[#allocation7 + $0x260] sm:$0xff] }
  0x25   :  { %218 = vmatpush.msra.mxu1 %v75_v47  ;;  %199 = vmatpush.msra.mxu0 %v58_v49  ;;  %v148_v13 = vld [vmem:[#allocation7 + $0x2e8] sm:$0xff]  ;;  %v162_v14 = vld [vmem:[#allocation7 + $0x358] sm:$0xff]  ;;  %v179_v15 = vld [vmem:[#allocation7 + $0x3e0] sm:$0xff] }
  0x26   :  { %259 = vmatpush.msra.mxu3 %v106_v50  ;;  %240 = vmatpush.msra.mxu2 %v89_v52  ;;  %v130_v16 = vld [vmem:[#allocation7 + $0x258] sm:$0xff]  ;;  %v147_v17 = vld [vmem:[#allocation7 + $0x2e0] sm:$0xff]  ;;  %v161_v18 = vld [vmem:[#allocation7 + $0x350] sm:$0xff] }
  0x27   :  { %219 = vmatpush.msra.mxu1 %v74_v51  ;;  %200 = vmatpush.msra.mxu0 %v57_v53  ;;  %v178_v19 = vld [vmem:[#allocation7 + $0x3d8] sm:$0xff]  ;;  %v129_v20 = vld [vmem:[#allocation7 + $0x250] sm:$0xff]  ;;  %v160_v22 = vld [vmem:[#allocation7 + $0x348] sm:$0xff] }
  0x28   :  { %260 = vmatpush.msra.mxu3 %v105_v54  ;;  %241 = vmatpush.msra.mxu2 %v88_v56  ;;  %v146_v21 = vld [vmem:[#allocation7 + $0x2d8] sm:$0xff]  ;;  %v177_v23 = vld [vmem:[#allocation7 + $0x3d0] sm:$0xff]  ;;  %v128_v24 = vld [vmem:[#allocation7 + $0x248] sm:$0xff] }
  0x29   :  { %220 = vmatpush.msra.mxu1 %v73_v55  ;;  %201 = vmatpush.msra.mxu0 %v56_v57  ;;  %v145_v25 = vld [vmem:[#allocation7 + $0x2d0] sm:$0xff]  ;;  %v159_v26 = vld [vmem:[#allocation7 + $0x340] sm:$0xff]  ;;  %v176_v27 = vld [vmem:[#allocation7 + $0x3c8] sm:$0xff] }
  0x2a   :  { %261 = vmatpush.msra.mxu3 %v104_v58  ;;  %242 = vmatpush.msra.mxu2 %v87_v60  ;;  %v127_v28 = vld [vmem:[#allocation7 + $0x240] sm:$0xff]  ;;  %v144_v29 = vld [vmem:[#allocation7 + $0x2c8] sm:$0xff]  ;;  %v158_v30 = vld [vmem:[#allocation7 + $0x338] sm:$0xff] }
  0x2b   :  { %221 = vmatpush.msra.mxu1 %v72_v59  ;;  %202 = vmatpush.msra.mxu0 %v55_v61  ;;  %v175_v31 = vld [vmem:[#allocation7 + $0x3c0] sm:$0xff]  ;;  %v126_v32 = vld [vmem:[#allocation7 + $0x238] sm:$0xff]  ;;  %v157_v34 = vld [vmem:[#allocation7 + $0x330] sm:$0xff] }
  0x2c   :  { %307 = vmatpush.msrb.mxu2 %v166_v62  ;;  %262 = vmatpush.msra.mxu3 %v103_v63  ;;  %v143_v33 = vld [vmem:[#allocation7 + $0x2c0] sm:$0xff]  ;;  %v174_v35 = vld [vmem:[#allocation7 + $0x3b8] sm:$0xff]  ;;  %v125_v36 = vld [vmem:[#allocation7 + $0x230] sm:$0xff] }
  0x2d   :  { %267 = vmatpush.msrb.mxu0 %v134_v0  ;;  %222 = vmatpush.msra.mxu1 %v71_v3  ;;  %v142_v37 = vld [vmem:[#allocation7 + $0x2b8] sm:$0xff]  ;;  %v156_v38 = vld [vmem:[#allocation7 + $0x328] sm:$0xff]  ;;  %v173_v39 = vld [vmem:[#allocation7 + $0x3b0] sm:$0xff] }
  0x2e   :  { %327 = vmatpush.msrb.mxu3 %v182_v1  ;;  %308 = vmatpush.msrb.mxu2 %v165_v2  ;;  %v124_v40 = vld [vmem:[#allocation7 + $0x228] sm:$0xff]  ;;  %v141_v41 = vld [vmem:[#allocation7 + $0x2b0] sm:$0xff]  ;;  %v155_v42 = vld [vmem:[#allocation7 + $0x320] sm:$0xff] }
  0x2f   :  { %268 = vmatpush.msrb.mxu0 %v133_v4  ;;  %287 = vmatpush.msrb.mxu1 %v150_v5  ;;  %v172_v43 = vld [vmem:[#allocation7 + $0x3a8] sm:$0xff]  ;;  %v49_v44 = vld [vmem:[#allocation4 + $0x10] sm:$0xff]  ;;  %v123_v45 = vld [vmem:[#allocation7 + $0x220] sm:$0xff] }
  0x30   :  { %309 = vmatpush.msrb.mxu2 %v164_v6  ;;  %328 = vmatpush.msrb.mxu3 %v181_v7  ;;  %v140_v46 = vld [vmem:[#allocation7 + $0x2a8] sm:$0xff]  ;;  %v154_v47 = vld [vmem:[#allocation7 + $0x318] sm:$0xff]  ;;  %v171_v48 = vld [vmem:[#allocation7 + $0x3a0] sm:$0xff] }
  0x31   :  { %269 = vmatpush.msrb.mxu0 %v132_v8  ;;  %288 = vmatpush.msrb.mxu1 %v149_v9  ;;  %v47_v49 = vld [vmem:[#allocation4] sm:$0xff]  ;;  %v50_v50 = vld [vmem:[#allocation4 + $0x18] sm:$0xff]  ;;  %v153_v53 = vld [vmem:[#allocation7 + $0x310] sm:$0xff] }
  0x32   :  { %310 = vmatpush.msrb.mxu2 %v163_v10  ;;  %329 = vmatpush.msrb.mxu3 %v180_v11  ;;  %v122_v51 = vld [vmem:[#allocation7 + $0x218] sm:$0xff]  ;;  %v139_v52 = vld [vmem:[#allocation7 + $0x2a0] sm:$0xff]  ;;  %v48_v55 = vld [vmem:[#allocation4 + $0x8] sm:$0xff] }
  0x33   :  { %270 = vmatpush.msrb.mxu0 %v131_v12  ;;  %289 = vmatpush.msrb.mxu1 %v148_v13  ;;  %v170_v54 = vld [vmem:[#allocation7 + $0x398] sm:$0xff]  ;;  %v121_v56 = vld [vmem:[#allocation7 + $0x210] sm:$0xff]  ;;  %v152_v58 = vld [vmem:[#allocation7 + $0x308] sm:$0xff] }
  0x34   :  { %311 = vmatpush.msrb.mxu2 %v162_v14  ;;  %330 = vmatpush.msrb.mxu3 %v179_v15  ;;  %v138_v57 = vld [vmem:[#allocation7 + $0x298] sm:$0xff]  ;;  %v169_v59 = vld [vmem:[#allocation7 + $0x390] sm:$0xff]  ;;  %v120_v60 = vld [vmem:[#allocation7 + $0x208] sm:$0xff] }
  0x35   :  { %271 = vmatpush.msrb.mxu0 %v130_v16  ;;  %290 = vmatpush.msrb.mxu1 %v147_v17  ;;  %v137_v61 = vld [vmem:[#allocation7 + $0x290] sm:$0xff]  ;;  %v151_v62 = vld [vmem:[#allocation7 + $0x300] sm:$0xff]  ;;  %v168_v63 = vld [vmem:[#allocation7 + $0x388] sm:$0xff] }
  0x36   :  { %312 = vmatpush.msrb.mxu2 %v161_v18  ;;  %331 = vmatpush.msrb.mxu3 %v178_v19  ;;  %v53_v0 = vld [vmem:[#allocation4 + $0x30] sm:$0xff]  ;;  %v119_v1 = vld [vmem:[#allocation7 + $0x200] sm:$0xff]  ;;  %v136_v2 = vld [vmem:[#allocation7 + $0x288] sm:$0xff] }
  0x37   :  { %272 = vmatpush.msrb.mxu0 %v129_v20  ;;  %291 = vmatpush.msrb.mxu1 %v146_v21  ;;  %v167_v3 = vld [vmem:[#allocation7 + $0x380] sm:$0xff]  ;;  %v54_v5 = vld [vmem:[#allocation4 + $0x38] sm:$0xff]  ;;  %v52_v7 = vld [vmem:[#allocation4 + $0x28] sm:$0xff] }
  0x38   :  { %313 = vmatpush.msrb.mxu2 %v160_v22  ;;  %332 = vmatpush.msrb.mxu3 %v177_v23  ;;  %v51_v4 = vld [vmem:[#allocation4 + $0x20] sm:$0xff] }
  0x39   :  { %273 = vmatpush.msrb.mxu0 %v128_v24  ;;  %292 = vmatpush.msrb.mxu1 %v145_v25  ;;  %v135_v6 = vld [vmem:[#allocation7 + $0x280] sm:$0xff]  ;;  %v348_v24 = vstv %s498_s0 }
  0x3a   :  { %314 = vmatpush.msrb.mxu2 %v159_v26  ;;  %333 = vmatpush.msrb.mxu3 %v176_v27  ;;  %v374_v8 = vld [vmem:[%s501_s3] ss:$0 sm:$0xff]  ;;  %s457_s3 = smov [#allocation9]  }
  0x3b   :  { %274 = vmatpush.msrb.mxu0 %v127_v28  ;;  %293 = vmatpush.msrb.mxu1 %v144_v29  ;;  %s356_s29 = sshll.u32 %s457_s3, 4  ;;  %s357_s29 = int_to_ptr.vmem [resolvable:$true] %s356_s29 }
  0x3c   :  { %315 = vmatpush.msrb.mxu2 %v158_v30  ;;  %334 = vmatpush.msrb.mxu3 %v175_v31 }
  0x3d   :  { %275 = vmatpush.msrb.mxu0 %v126_v32  ;;  %294 = vmatpush.msrb.mxu1 %v143_v33 }
  0x3e   :  { %316 = vmatpush.msrb.mxu2 %v157_v34  ;;  %335 = vmatpush.msrb.mxu3 %v174_v35 }
  0x3f   :  { %276 = vmatpush.msrb.mxu0 %v125_v36  ;;  %295 = vmatpush.msrb.mxu1 %v142_v37 }
  0x40   :  { %317 = vmatpush.msrb.mxu2 %v156_v38  ;;  %336 = vmatpush.msrb.mxu3 %v173_v39 }
  0x41   :  { %277 = vmatpush.msrb.mxu0 %v124_v40  ;;  %296 = vmatpush.msrb.mxu1 %v141_v41 }
  0x42   :  { %318 = vmatpush.msrb.mxu2 %v155_v42  ;;  %337 = vmatpush.msrb.mxu3 %v172_v43 }
  0x43   :  { %243 = vmatmul.f32.vlgmr.msra.gmra.mxu2 %v49_v44  ;;  %278 = vmatpush.msrb.mxu0 %v123_v45 }
  0x44   :  { %297 = vmatpush.msrb.mxu1 %v140_v46  ;;  %319 = vmatpush.msrb.mxu2 %v154_v47 }
  0x45   :  { %338 = vmatpush.msrb.mxu3 %v171_v48  ;;  %203 = vmatmul.f32.vlgmr.msra.gmra.mxu0 %v47_v49 }
  0x46   :  { %263 = vmatmul.f32.vlgmr.msra.gmra.mxu3 %v50_v50  ;;  %279 = vmatpush.msrb.mxu0 %v122_v51 }
  0x47   :  { %298 = vmatpush.msrb.mxu1 %v139_v52  ;;  %320 = vmatpush.msrb.mxu2 %v153_v53 }
  0x48   :  { %339 = vmatpush.msrb.mxu3 %v170_v54  ;;  %223 = vmatmul.f32.vlgmr.msra.gmra.mxu1 %v48_v55 }
  0x49   :  { %280 = vmatpush.msrb.mxu0 %v121_v56  ;;  %299 = vmatpush.msrb.mxu1 %v138_v57 }
  0x4a   :  { %321 = vmatpush.msrb.mxu2 %v152_v58  ;;  %340 = vmatpush.msrb.mxu3 %v169_v59 }
  0x4b   :  { %281 = vmatpush.msrb.mxu0 %v120_v60  ;;  %300 = vmatpush.msrb.mxu1 %v137_v61 }
  0x4c   :  { %322 = vmatpush.msrb.mxu2 %v151_v62  ;;  %341 = vmatpush.msrb.mxu3 %v168_v63 }
  0x4d   :  { %323 = vmatmul.f32.vlgmr.msrb.gmra.mxu2 %v53_v0  ;;  %282 = vmatpush.msrb.mxu0 %v119_v1 }
  0x4e   :  { %301 = vmatpush.msrb.mxu1 %v136_v2  ;;  %342 = vmatpush.msrb.mxu3 %v167_v3 }
  0x4f   :  { %283 = vmatmul.f32.vlgmr.msrb.gmra.mxu0 %v51_v4  ;;  %343 = vmatmul.f32.vlgmr.msrb.gmra.mxu3 %v54_v5 }
  0x50   :  { %302 = vmatpush.msrb.mxu1 %v135_v6 }
  0x51   :  { %303 = vmatmul.f32.vlgmr.msrb.gmra.mxu1 %v52_v7 }
  0xc2   :  { %v204_v9 = vpop.f32.mrf.mxu0 }
  0xc3   :  { %v205_v10 = vadd.f32 %v374_v8, %v204_v9 }
  0xc5   :  { %v224_v11 = vpop.f32.mrf.mxu1 }
  0xc6   :  { %v225_v12 = vadd.f32 %v224_v11, %v205_v10  ;;  %v244_v13 = vpop.f32.mrf.mxu2 }
  0xc8   :  { %v245_v14 = vadd.f32 %v244_v13, %v225_v12 }
  0xc9   :  { %v264_v15 = vpop.f32.mrf.mxu3 }
  0xca   :  { %v265_v16 = vadd.f32 %v264_v15, %v245_v14 }
  0xcc   :  { %v284_v17 = vpop.f32.mrf.mxu0 }
  0xcd   :  { %v285_v18 = vadd.f32 %v284_v17, %v265_v16 }
  0xce   :  { %v304_v19 = vpop.f32.mrf.mxu1 }
  0xcf   :  { %v305_v20 = vadd.f32 %v304_v19, %v285_v18 }
  0xd0   :  { %v324_v21 = vpop.f32.mrf.mxu2 }
  0xd1   :  { %v325_v22 = vadd.f32 %v324_v21, %v305_v20 }
  0xd2   :  { %v344_v23 = vpop.f32.mrf.mxu3 }
  0xd3   :  { %v345_v25 = vadd.f32 %v344_v23, %v325_v22 }
  0xd5   :  { %v349_v26 = vmul.f32 %v348_v24, %v345_v25 }
  0xd7   :  { %350 = vst [vmem:[#allocation9] sm:$0xff] %v349_v26 }
  0xd8   :  { %361 = dma.vmem_to_hbm [thread:$0]  %s357_s29, 128, %s359_s6, [#allocation6]  }
  0xd9   :  { %451 = dma.done.wait [#allocation6], 128  }
  0xda   :  { %452 = vsyncadd [#allocation6], 4294967168 }
  0xdb   :  { %366 = vsyncpa [#allocation5], 1 }
  0xdc   :  { %367 = vsyncpa [#allocation8], 1 }
  0xdd   :  { %368 = vsyncpa [#allocation6], 1 }

</bundles_post_ra>
